<compile_context>
chip_gen: v6e
topology: v6e:2x2x1
jax: 0.10.0
libtpu: 0.0.40
codegen_flags: <defaults>
</compile_context>

<pallas_src>
import functools

import jax
import jax.numpy as jnp
from jax import lax
from jax.experimental import pallas as pl
from jax.experimental.pallas import tpu as pltpu


def threshold_predictor_kernel(
    x_ref, wqkv_ref, bqkv_ref, wo_ref, bo_ref, g_ref, beta_ref, wf_ref, bf_ref,
    pred_ref, attn_ref, *, num_heads,
):
    BB, N, D = x_ref.shape
    dh = D // num_heads
    scale = 1.0 / (dh ** 0.5)

    # Fold batch into rows: one (BB*N, D) @ (D, 3D) fused QKV matmul.
    x = x_ref[...].reshape(BB * N, D)
    qkv = jnp.dot(x, wqkv_ref[...], preferred_element_type=jnp.float32) + bqkv_ref[0]
    q = qkv[:, 0 * D:1 * D]
    k = qkv[:, 1 * D:2 * D]
    v = qkv[:, 2 * D:3 * D]

    # Per-(batch item, head) attention; tiny static shapes -> Python-unrolled.
    ctx_rows = []
    attn_rows = []
    for b in range(BB):
        qb = q[b * N:(b + 1) * N]
        kb = k[b * N:(b + 1) * N]
        vb = v[b * N:(b + 1) * N]
        head_ctx = []
        head_attn = []
        for h in range(num_heads):
            qh = qb[:, h * dh:(h + 1) * dh]
            kh = kb[:, h * dh:(h + 1) * dh]
            vh = vb[:, h * dh:(h + 1) * dh]
            # Contract last dim of both operands -> no explicit kh.T transpose.
            s = lax.dot_general(qh, kh, (((1,), (1,)), ((), ())),
                                preferred_element_type=jnp.float32) * scale
            s = s - jnp.max(s, axis=-1, keepdims=True)        # numerically-stable softmax
            e = jnp.exp(s)
            inv = pl.reciprocal(jnp.sum(e, axis=-1, keepdims=True))   # exact reciprocal
            p = e * inv                                        # (N, N)
            head_attn.append(p)
            head_ctx.append(jnp.dot(p, vh, preferred_element_type=jnp.float32))
        ctx_rows.append(jnp.concatenate(head_ctx, axis=-1))            # (N, D), in vregs
        attn_rows.append(jnp.concatenate(head_attn, axis=-1)[None])    # (1, N, H*N)

    # Single assembled attention-weight store per grid step (heads concatenated on lanes).
    attn_ref[...] = jnp.concatenate(attn_rows, axis=0)                 # (BB, N, H*N)

    context = jnp.concatenate(ctx_rows, axis=0)                        # (BB*N, D)

    # Output projection + residual + LayerNorm (eps=1e-5, biased variance — PyTorch semantics).
    out = jnp.dot(context, wo_ref[...], preferred_element_type=jnp.float32) + bo_ref[0]
    resid = out + x
    mu = jnp.mean(resid, axis=-1, keepdims=True)
    var = jnp.mean((resid - mu) ** 2, axis=-1, keepdims=True)
    y = (resid - mu) * lax.rsqrt(var + 1e-5)
    y = y * g_ref[0] + beta_ref[0]                                     # (BB*N, D)

    # Mean over columns per batch item, then Linear(D -> 1) as VPU multiply + lane reduce.
    a_o = jnp.mean(y.reshape(BB, N, D), axis=1)                        # (BB, D)
    pred = jnp.sum(a_o * wf_ref[0], axis=-1, keepdims=True) + bf_ref[0]  # (BB, 1)
    pred_ref[0] = pred


def _default_batch_blocks(B):
    # v7x has 2 TensorCores/chip: keep >=2 parallel grid steps so both get work.
    # v5e/v6e (1 TC): fully fuse the batch into one grid step.
    try:
        kind = jax.devices()[0].device_kind.lower()
    except Exception:
        kind = ""
    if "v7" in kind and B >= 2 and B % 2 == 0:
        return 2
    return 1


def threshold_predictor(x, kernel_params, num_heads, batch_blocks=None):
    """x: (B, N, D) float32. Returns (pred (B,), attn_weights (B, H, N, N))."""
    B, N, D = x.shape
    H = num_heads
    if batch_blocks is None:
        batch_blocks = _default_batch_blocks(B)
    assert B % batch_blocks == 0
    BB = B // batch_blocks

    def rep(shape):
        nd = len(shape)
        return pl.BlockSpec(shape, lambda i: (0,) * nd)

    in_specs = [
        pl.BlockSpec((BB, N, D), lambda i: (i, 0, 0)),   # x (batch block)
        rep((D, 3 * D)), rep((1, 3 * D)),                # fused Wqkv, bqkv
        rep((D, D)), rep((1, D)),                        # Wo, bo
        rep((1, D)), rep((1, D)),                        # LayerNorm gamma, beta
        rep((1, D)), rep((1, 1)),                        # Wf (row), bf
    ]
    out_shape = (
        jax.ShapeDtypeStruct((batch_blocks, BB, 1), jnp.float32),   # pred (per block)
        jax.ShapeDtypeStruct((B, N, H * N), jnp.float32),           # attn, lane-concat heads
    )
    out_specs = (
        pl.BlockSpec((1, BB, 1), lambda i: (i, 0, 0)),
        pl.BlockSpec((BB, N, H * N), lambda i: (i, 0, 0)),
    )

    pred_blk, attn_flat = pl.pallas_call(
        functools.partial(threshold_predictor_kernel, num_heads=H),
        grid=(batch_blocks,),
        in_specs=in_specs,
        out_specs=out_specs,
        out_shape=out_shape,
        compiler_params=pltpu.CompilerParams(dimension_semantics=("parallel",)),
    )(x, *kernel_params)

    pred = pred_blk.reshape(B)
    attn = attn_flat.reshape(B, N, H, N).transpose(0, 2, 1, 3)   # back to (B, H, N, N)
    return pred, attn


def ref_forward(x, torch_params, num_heads):
    """Plain-JAX reference mirroring the PyTorch forward (eval mode)."""
    Wq, bq, Wk, bk, Wv, bv, Wo, bo, g, beta, Wf, bf = torch_params
    B, N, D = x.shape
    H = num_heads
    dh = D // H
    q = (x @ Wq.T + bq).reshape(B, N, H, dh).transpose(0, 2, 1, 3)
    k = (x @ Wk.T + bk).reshape(B, N, H, dh).transpose(0, 2, 1, 3)
    v = (x @ Wv.T + bv).reshape(B, N, H, dh).transpose(0, 2, 1, 3)
    s = jnp.einsum("bhqd,bhkd->bhqk", q, k) / (dh ** 0.5)
    p = jax.nn.softmax(s, axis=-1)
    ctx = jnp.einsum("bhqk,bhkd->bhqd", p, v).transpose(0, 2, 1, 3).reshape(B, N, D)
    out = ctx @ Wo.T + bo
    r = out + x
    mu = r.mean(-1, keepdims=True)
    var = ((r - mu) ** 2).mean(-1, keepdims=True)
    y = (r - mu) / jnp.sqrt(var + 1e-5) * g + beta
    a_o = y.mean(axis=1)
    pred = (a_o @ Wf.T + bf).squeeze(-1)
    return pred, p


if __name__ == "__main__":
    B, N, D, H = 2, 8, 32, 4   # batch, num_columns, feature_dim, num_heads
    key = jax.random.PRNGKey(0)
    keys = jax.random.split(key, 16)

    # Deterministic synthetic parameters (PyTorch Linear convention: W is (out, in)).
    Wq = jax.random.normal(keys[0], (D, D), jnp.float32) * 0.1
    bq = jax.random.normal(keys[1], (D,), jnp.float32) * 0.01
    Wk = jax.random.normal(keys[2], (D, D), jnp.float32) * 0.1
    bk = jax.random.normal(keys[3], (D,), jnp.float32) * 0.01
    Wv = jax.random.normal(keys[4], (D, D), jnp.float32) * 0.1
    bv = jax.random.normal(keys[5], (D,), jnp.float32) * 0.01
    Wo = jax.random.normal(keys[6], (D, D), jnp.float32) * 0.1
    bo = jax.random.normal(keys[7], (D,), jnp.float32) * 0.01
    ln_g = 1.0 + 0.1 * jax.random.normal(keys[8], (D,), jnp.float32)
    ln_b = 0.1 * jax.random.normal(keys[9], (D,), jnp.float32)
    Wf = jax.random.normal(keys[10], (1, D), jnp.float32) * 0.1
    bf = jax.random.normal(keys[11], (1,), jnp.float32) * 0.01

    torch_params = (Wq, bq, Wk, bk, Wv, bv, Wo, bo, ln_g, ln_b, Wf, bf)

    # Kernel-side layout: fused QKV weight (in, 3*out), weights transposed to (in, out),
    # biases as (1, *) rows, Wf kept as a (1, D) row for the VPU reduce, bf as (1, 1).
    Wqkv = jnp.concatenate([Wq.T, Wk.T, Wv.T], axis=1)     # (D, 3D)
    bqkv = jnp.concatenate([bq, bk, bv])[None, :]          # (1, 3D)
    kernel_params = (
        Wqkv, bqkv,
        Wo.T, bo[None, :],
        ln_g[None, :], ln_b[None, :],
        Wf, bf[None, :],
    )

    x = jax.random.normal(keys[12], (B, N, D), jnp.float32)

    pred, attn = threshold_predictor(x, kernel_params, H)
    jax.block_until_ready((pred, attn))

    pred_r, attn_r = ref_forward(x, torch_params, H)
    assert pred.shape == (B,) and attn.shape == (B, H, N, N)
    assert jnp.allclose(pred, pred_r, atol=1e-4, rtol=1e-4), "pred mismatch"
    assert jnp.allclose(attn, attn_r, atol=1e-5, rtol=1e-4), "attention weights mismatch"

    print("KERNEL_OK")
</pallas_src>

<mosaic_0001>
module attributes {stable_mosaic.version = 11 : i64} {
  func.func @threshold_predictor_kernel(%arg0: i32, %arg1: memref<2x8x32xf32, #tpu.memory_space<vmem>>, %arg2: memref<32x96xf32, #tpu.memory_space<vmem>>, %arg3: memref<1x96xf32, #tpu.memory_space<vmem>>, %arg4: memref<32x32xf32, #tpu.memory_space<vmem>>, %arg5: memref<1x32xf32, #tpu.memory_space<vmem>>, %arg6: memref<1x32xf32, #tpu.memory_space<vmem>>, %arg7: memref<1x32xf32, #tpu.memory_space<vmem>>, %arg8: memref<1x32xf32, #tpu.memory_space<vmem>>, %arg9: memref<1x1xf32, #tpu.memory_space<vmem>>, %arg10: memref<1x2x1xf32, #tpu.memory_space<vmem>>, %arg11: memref<2x8x32xf32, #tpu.memory_space<vmem>>) attributes {dimension_semantics = [#tpu.dimension_semantics<parallel>], iteration_bounds = array<i64: 1>, scalar_prefetch = 0 : i64, scratch_operands = 0 : i64, tpu.core_type = #tpu.core_type<tc>, window_params = [{transform_indices = @transform_0, window_bounds = array<i64: 2, 8, 32>}, {pipeline_mode = #tpu.pipeline_mode<synchronous>, transform_indices = @transform_1, window_bounds = array<i64: 32, 96>}, {pipeline_mode = #tpu.pipeline_mode<synchronous>, transform_indices = @transform_2, window_bounds = array<i64: 1, 96>}, {pipeline_mode = #tpu.pipeline_mode<synchronous>, transform_indices = @transform_3, window_bounds = array<i64: 32, 32>}, {pipeline_mode = #tpu.pipeline_mode<synchronous>, transform_indices = @transform_4, window_bounds = array<i64: 1, 32>}, {pipeline_mode = #tpu.pipeline_mode<synchronous>, transform_indices = @transform_5, window_bounds = array<i64: 1, 32>}, {pipeline_mode = #tpu.pipeline_mode<synchronous>, transform_indices = @transform_6, window_bounds = array<i64: 1, 32>}, {pipeline_mode = #tpu.pipeline_mode<synchronous>, transform_indices = @transform_7, window_bounds = array<i64: 1, 32>}, {pipeline_mode = #tpu.pipeline_mode<synchronous>, transform_indices = @transform_8, window_bounds = array<i64: 1, 1>}, {transform_indices = @transform_9, window_bounds = array<i64: 1, 2, 1>}, {transform_indices = @transform_10, window_bounds = array<i64: 2, 8, 32>}]} {
    %c0 = arith.constant 0 : index
    %c0_0 = arith.constant 0 : index
    %c0_1 = arith.constant 0 : index
    %0 = vector.load %arg1[%c0, %c0_0, %c0_1] : memref<2x8x32xf32, #tpu.memory_space<vmem>>, vector<2x8x32xf32>
    %1 = vector.shape_cast %0 : vector<2x8x32xf32> to vector<16x32xf32>
    %c0_2 = arith.constant 0 : index
    %c0_3 = arith.constant 0 : index
    %2 = vector.load %arg2[%c0_2, %c0_3] : memref<32x96xf32, #tpu.memory_space<vmem>>, vector<32x96xf32>
    %cst = arith.constant dense<0.000000e+00> : vector<16x96xf32>
    %3 = tpu.matmul %1, %2, %cst {dimension_numbers = #tpu.dot_dimension_numbers<[1], [0], [0], [1], [0, 0, 1, 1], [], []>} : vector<16x32xf32>, vector<32x96xf32>, vector<16x96xf32> -> vector<16x96xf32>
    %c0_4 = arith.constant 0 : index
    %c0_5 = arith.constant 0 : index
    %4 = vector.load %arg3[%c0_4, %c0_5] : memref<1x96xf32, #tpu.memory_space<vmem>>, vector<1x96xf32>
    %5 = vector.shape_cast %4 : vector<1x96xf32> to vector<96xf32>
    %6 = vector.shape_cast %5 : vector<96xf32> to vector<1x96xf32>
    %7 = vector.broadcast %6 : vector<1x96xf32> to vector<16x96xf32>
    %8 = arith.addf %3, %7 : vector<16x96xf32>
    %9 = vector.extract_strided_slice %8 {offsets = [0, 0], sizes = [16, 32], strides = [1, 1]} : vector<16x96xf32> to vector<16x32xf32>
    %10 = vector.extract_strided_slice %8 {offsets = [0, 32], sizes = [16, 32], strides = [1, 1]} : vector<16x96xf32> to vector<16x32xf32>
    %11 = vector.extract_strided_slice %8 {offsets = [0, 64], sizes = [16, 32], strides = [1, 1]} : vector<16x96xf32> to vector<16x32xf32>
    %12 = vector.extract_strided_slice %9 {offsets = [0, 0], sizes = [8, 32], strides = [1, 1]} : vector<16x32xf32> to vector<8x32xf32>
    %13 = vector.extract_strided_slice %10 {offsets = [0, 0], sizes = [8, 32], strides = [1, 1]} : vector<16x32xf32> to vector<8x32xf32>
    %14 = vector.extract_strided_slice %11 {offsets = [0, 0], sizes = [8, 32], strides = [1, 1]} : vector<16x32xf32> to vector<8x32xf32>
    %15 = vector.extract_strided_slice %12 {offsets = [0, 0], sizes = [8, 8], strides = [1, 1]} : vector<8x32xf32> to vector<8x8xf32>
    %16 = vector.extract_strided_slice %13 {offsets = [0, 0], sizes = [8, 8], strides = [1, 1]} : vector<8x32xf32> to vector<8x8xf32>
    %17 = vector.extract_strided_slice %14 {offsets = [0, 0], sizes = [8, 8], strides = [1, 1]} : vector<8x32xf32> to vector<8x8xf32>
    %cst_6 = arith.constant dense<0.000000e+00> : vector<8x8xf32>
    %18 = tpu.matmul %15, %16, %cst_6 {dimension_numbers = #tpu.dot_dimension_numbers<[1], [1], [0], [0], [0, 0, 1, 0], [], []>} : vector<8x8xf32>, vector<8x8xf32>, vector<8x8xf32> -> vector<8x8xf32>
    %cst_7 = arith.constant 0.353553385 : f32
    %19 = vector.broadcast %cst_7 : f32 to vector<8x8xf32>
    %20 = arith.mulf %18, %19 : vector<8x8xf32>
    %cst_8 = arith.constant dense<0xFF800000> : vector<8xf32>
    %21 = vector.multi_reduction <maximumf>, %20, %cst_8 [1] : vector<8x8xf32> to vector<8xf32>
    %22 = vector.shape_cast %21 : vector<8xf32> to vector<8x1xf32>
    %23 = vector.broadcast %22 : vector<8x1xf32> to vector<8x8xf32>
    %24 = arith.subf %20, %23 : vector<8x8xf32>
    %25 = math.exp %24 : vector<8x8xf32>
    %cst_9 = arith.constant dense<0.000000e+00> : vector<8xf32>
    %26 = vector.multi_reduction <add>, %25, %cst_9 [1] : vector<8x8xf32> to vector<8xf32>
    %27 = vector.shape_cast %26 : vector<8xf32> to vector<8x1xf32>
    %28 = tpu.reciprocal %27 : vector<8x1xf32> -> vector<8x1xf32>
    %29 = vector.broadcast %28 : vector<8x1xf32> to vector<8x8xf32>
    %30 = arith.mulf %25, %29 : vector<8x8xf32>
    %cst_10 = arith.constant dense<0.000000e+00> : vector<8x8xf32>
    %31 = tpu.matmul %30, %17, %cst_10 {dimension_numbers = #tpu.dot_dimension_numbers<[1], [0], [0], [1], [0, 0, 1, 1], [], []>} : vector<8x8xf32>, vector<8x8xf32>, vector<8x8xf32> -> vector<8x8xf32>
    %32 = vector.extract_strided_slice %12 {offsets = [0, 8], sizes = [8, 8], strides = [1, 1]} : vector<8x32xf32> to vector<8x8xf32>
    %33 = vector.extract_strided_slice %13 {offsets = [0, 8], sizes = [8, 8], strides = [1, 1]} : vector<8x32xf32> to vector<8x8xf32>
    %34 = vector.extract_strided_slice %14 {offsets = [0, 8], sizes = [8, 8], strides = [1, 1]} : vector<8x32xf32> to vector<8x8xf32>
    %cst_11 = arith.constant dense<0.000000e+00> : vector<8x8xf32>
    %35 = tpu.matmul %32, %33, %cst_11 {dimension_numbers = #tpu.dot_dimension_numbers<[1], [1], [0], [0], [0, 0, 1, 0], [], []>} : vector<8x8xf32>, vector<8x8xf32>, vector<8x8xf32> -> vector<8x8xf32>
    %cst_12 = arith.constant 0.353553385 : f32
    %36 = vector.broadcast %cst_12 : f32 to vector<8x8xf32>
    %37 = arith.mulf %35, %36 : vector<8x8xf32>
    %cst_13 = arith.constant dense<0xFF800000> : vector<8xf32>
    %38 = vector.multi_reduction <maximumf>, %37, %cst_13 [1] : vector<8x8xf32> to vector<8xf32>
    %39 = vector.shape_cast %38 : vector<8xf32> to vector<8x1xf32>
    %40 = vector.broadcast %39 : vector<8x1xf32> to vector<8x8xf32>
    %41 = arith.subf %37, %40 : vector<8x8xf32>
    %42 = math.exp %41 : vector<8x8xf32>
    %cst_14 = arith.constant dense<0.000000e+00> : vector<8xf32>
    %43 = vector.multi_reduction <add>, %42, %cst_14 [1] : vector<8x8xf32> to vector<8xf32>
    %44 = vector.shape_cast %43 : vector<8xf32> to vector<8x1xf32>
    %45 = tpu.reciprocal %44 : vector<8x1xf32> -> vector<8x1xf32>
    %46 = vector.broadcast %45 : vector<8x1xf32> to vector<8x8xf32>
    %47 = arith.mulf %42, %46 : vector<8x8xf32>
    %cst_15 = arith.constant dense<0.000000e+00> : vector<8x8xf32>
    %48 = tpu.matmul %47, %34, %cst_15 {dimension_numbers = #tpu.dot_dimension_numbers<[1], [0], [0], [1], [0, 0, 1, 1], [], []>} : vector<8x8xf32>, vector<8x8xf32>, vector<8x8xf32> -> vector<8x8xf32>
    %49 = vector.extract_strided_slice %12 {offsets = [0, 16], sizes = [8, 8], strides = [1, 1]} : vector<8x32xf32> to vector<8x8xf32>
    %50 = vector.extract_strided_slice %13 {offsets = [0, 16], sizes = [8, 8], strides = [1, 1]} : vector<8x32xf32> to vector<8x8xf32>
    %51 = vector.extract_strided_slice %14 {offsets = [0, 16], sizes = [8, 8], strides = [1, 1]} : vector<8x32xf32> to vector<8x8xf32>
    %cst_16 = arith.constant dense<0.000000e+00> : vector<8x8xf32>
    %52 = tpu.matmul %49, %50, %cst_16 {dimension_numbers = #tpu.dot_dimension_numbers<[1], [1], [0], [0], [0, 0, 1, 0], [], []>} : vector<8x8xf32>, vector<8x8xf32>, vector<8x8xf32> -> vector<8x8xf32>
    %cst_17 = arith.constant 0.353553385 : f32
    %53 = vector.broadcast %cst_17 : f32 to vector<8x8xf32>
    %54 = arith.mulf %52, %53 : vector<8x8xf32>
    %cst_18 = arith.constant dense<0xFF800000> : vector<8xf32>
    %55 = vector.multi_reduction <maximumf>, %54, %cst_18 [1] : vector<8x8xf32> to vector<8xf32>
    %56 = vector.shape_cast %55 : vector<8xf32> to vector<8x1xf32>
    %57 = vector.broadcast %56 : vector<8x1xf32> to vector<8x8xf32>
    %58 = arith.subf %54, %57 : vector<8x8xf32>
    %59 = math.exp %58 : vector<8x8xf32>
    %cst_19 = arith.constant dense<0.000000e+00> : vector<8xf32>
    %60 = vector.multi_reduction <add>, %59, %cst_19 [1] : vector<8x8xf32> to vector<8xf32>
    %61 = vector.shape_cast %60 : vector<8xf32> to vector<8x1xf32>
    %62 = tpu.reciprocal %61 : vector<8x1xf32> -> vector<8x1xf32>
    %63 = vector.broadcast %62 : vector<8x1xf32> to vector<8x8xf32>
    %64 = arith.mulf %59, %63 : vector<8x8xf32>
    %cst_20 = arith.constant dense<0.000000e+00> : vector<8x8xf32>
    %65 = tpu.matmul %64, %51, %cst_20 {dimension_numbers = #tpu.dot_dimension_numbers<[1], [0], [0], [1], [0, 0, 1, 1], [], []>} : vector<8x8xf32>, vector<8x8xf32>, vector<8x8xf32> -> vector<8x8xf32>
    %66 = vector.extract_strided_slice %12 {offsets = [0, 24], sizes = [8, 8], strides = [1, 1]} : vector<8x32xf32> to vector<8x8xf32>
    %67 = vector.extract_strided_slice %13 {offsets = [0, 24], sizes = [8, 8], strides = [1, 1]} : vector<8x32xf32> to vector<8x8xf32>
    %68 = vector.extract_strided_slice %14 {offsets = [0, 24], sizes = [8, 8], strides = [1, 1]} : vector<8x32xf32> to vector<8x8xf32>
    %cst_21 = arith.constant dense<0.000000e+00> : vector<8x8xf32>
    %69 = tpu.matmul %66, %67, %cst_21 {dimension_numbers = #tpu.dot_dimension_numbers<[1], [1], [0], [0], [0, 0, 1, 0], [], []>} : vector<8x8xf32>, vector<8x8xf32>, vector<8x8xf32> -> vector<8x8xf32>
    %cst_22 = arith.constant 0.353553385 : f32
    %70 = vector.broadcast %cst_22 : f32 to vector<8x8xf32>
    %71 = arith.mulf %69, %70 : vector<8x8xf32>
    %cst_23 = arith.constant dense<0xFF800000> : vector<8xf32>
    %72 = vector.multi_reduction <maximumf>, %71, %cst_23 [1] : vector<8x8xf32> to vector<8xf32>
    %73 = vector.shape_cast %72 : vector<8xf32> to vector<8x1xf32>
    %74 = vector.broadcast %73 : vector<8x1xf32> to vector<8x8xf32>
    %75 = arith.subf %71, %74 : vector<8x8xf32>
    %76 = math.exp %75 : vector<8x8xf32>
    %cst_24 = arith.constant dense<0.000000e+00> : vector<8xf32>
    %77 = vector.multi_reduction <add>, %76, %cst_24 [1] : vector<8x8xf32> to vector<8xf32>
    %78 = vector.shape_cast %77 : vector<8xf32> to vector<8x1xf32>
    %79 = tpu.reciprocal %78 : vector<8x1xf32> -> vector<8x1xf32>
    %80 = vector.broadcast %79 : vector<8x1xf32> to vector<8x8xf32>
    %81 = arith.mulf %76, %80 : vector<8x8xf32>
    %cst_25 = arith.constant dense<0.000000e+00> : vector<8x8xf32>
    %82 = tpu.matmul %81, %68, %cst_25 {dimension_numbers = #tpu.dot_dimension_numbers<[1], [0], [0], [1], [0, 0, 1, 1], [], []>} : vector<8x8xf32>, vector<8x8xf32>, vector<8x8xf32> -> vector<8x8xf32>
    %83 = tpu.concatenate %31, %48, %65, %82 in 1 : vector<8x8xf32>, vector<8x8xf32>, vector<8x8xf32>, vector<8x8xf32> -> vector<8x32xf32>
    %84 = tpu.concatenate %30, %47, %64, %81 in 1 : vector<8x8xf32>, vector<8x8xf32>, vector<8x8xf32>, vector<8x8xf32> -> vector<8x32xf32>
    %85 = vector.shape_cast %84 : vector<8x32xf32> to vector<1x8x32xf32>
    %86 = vector.extract_strided_slice %9 {offsets = [8, 0], sizes = [8, 32], strides = [1, 1]} : vector<16x32xf32> to vector<8x32xf32>
    %87 = vector.extract_strided_slice %10 {offsets = [8, 0], sizes = [8, 32], strides = [1, 1]} : vector<16x32xf32> to vector<8x32xf32>
    %88 = vector.extract_strided_slice %11 {offsets = [8, 0], sizes = [8, 32], strides = [1, 1]} : vector<16x32xf32> to vector<8x32xf32>
    %89 = vector.extract_strided_slice %86 {offsets = [0, 0], sizes = [8, 8], strides = [1, 1]} : vector<8x32xf32> to vector<8x8xf32>
    %90 = vector.extract_strided_slice %87 {offsets = [0, 0], sizes = [8, 8], strides = [1, 1]} : vector<8x32xf32> to vector<8x8xf32>
    %91 = vector.extract_strided_slice %88 {offsets = [0, 0], sizes = [8, 8], strides = [1, 1]} : vector<8x32xf32> to vector<8x8xf32>
    %cst_26 = arith.constant dense<0.000000e+00> : vector<8x8xf32>
    %92 = tpu.matmul %89, %90, %cst_26 {dimension_numbers = #tpu.dot_dimension_numbers<[1], [1], [0], [0], [0, 0, 1, 0], [], []>} : vector<8x8xf32>, vector<8x8xf32>, vector<8x8xf32> -> vector<8x8xf32>
    %cst_27 = arith.constant 0.353553385 : f32
    %93 = vector.broadcast %cst_27 : f32 to vector<8x8xf32>
    %94 = arith.mulf %92, %93 : vector<8x8xf32>
    %cst_28 = arith.constant dense<0xFF800000> : vector<8xf32>
    %95 = vector.multi_reduction <maximumf>, %94, %cst_28 [1] : vector<8x8xf32> to vector<8xf32>
    %96 = vector.shape_cast %95 : vector<8xf32> to vector<8x1xf32>
    %97 = vector.broadcast %96 : vector<8x1xf32> to vector<8x8xf32>
    %98 = arith.subf %94, %97 : vector<8x8xf32>
    %99 = math.exp %98 : vector<8x8xf32>
    %cst_29 = arith.constant dense<0.000000e+00> : vector<8xf32>
    %100 = vector.multi_reduction <add>, %99, %cst_29 [1] : vector<8x8xf32> to vector<8xf32>
    %101 = vector.shape_cast %100 : vector<8xf32> to vector<8x1xf32>
    %102 = tpu.reciprocal %101 : vector<8x1xf32> -> vector<8x1xf32>
    %103 = vector.broadcast %102 : vector<8x1xf32> to vector<8x8xf32>
    %104 = arith.mulf %99, %103 : vector<8x8xf32>
    %cst_30 = arith.constant dense<0.000000e+00> : vector<8x8xf32>
    %105 = tpu.matmul %104, %91, %cst_30 {dimension_numbers = #tpu.dot_dimension_numbers<[1], [0], [0], [1], [0, 0, 1, 1], [], []>} : vector<8x8xf32>, vector<8x8xf32>, vector<8x8xf32> -> vector<8x8xf32>
    %106 = vector.extract_strided_slice %86 {offsets = [0, 8], sizes = [8, 8], strides = [1, 1]} : vector<8x32xf32> to vector<8x8xf32>
    %107 = vector.extract_strided_slice %87 {offsets = [0, 8], sizes = [8, 8], strides = [1, 1]} : vector<8x32xf32> to vector<8x8xf32>
    %108 = vector.extract_strided_slice %88 {offsets = [0, 8], sizes = [8, 8], strides = [1, 1]} : vector<8x32xf32> to vector<8x8xf32>
    %cst_31 = arith.constant dense<0.000000e+00> : vector<8x8xf32>
    %109 = tpu.matmul %106, %107, %cst_31 {dimension_numbers = #tpu.dot_dimension_numbers<[1], [1], [0], [0], [0, 0, 1, 0], [], []>} : vector<8x8xf32>, vector<8x8xf32>, vector<8x8xf32> -> vector<8x8xf32>
    %cst_32 = arith.constant 0.353553385 : f32
    %110 = vector.broadcast %cst_32 : f32 to vector<8x8xf32>
    %111 = arith.mulf %109, %110 : vector<8x8xf32>
    %cst_33 = arith.constant dense<0xFF800000> : vector<8xf32>
    %112 = vector.multi_reduction <maximumf>, %111, %cst_33 [1] : vector<8x8xf32> to vector<8xf32>
    %113 = vector.shape_cast %112 : vector<8xf32> to vector<8x1xf32>
    %114 = vector.broadcast %113 : vector<8x1xf32> to vector<8x8xf32>
    %115 = arith.subf %111, %114 : vector<8x8xf32>
    %116 = math.exp %115 : vector<8x8xf32>
    %cst_34 = arith.constant dense<0.000000e+00> : vector<8xf32>
    %117 = vector.multi_reduction <add>, %116, %cst_34 [1] : vector<8x8xf32> to vector<8xf32>
    %118 = vector.shape_cast %117 : vector<8xf32> to vector<8x1xf32>
    %119 = tpu.reciprocal %118 : vector<8x1xf32> -> vector<8x1xf32>
    %120 = vector.broadcast %119 : vector<8x1xf32> to vector<8x8xf32>
    %121 = arith.mulf %116, %120 : vector<8x8xf32>
    %cst_35 = arith.constant dense<0.000000e+00> : vector<8x8xf32>
    %122 = tpu.matmul %121, %108, %cst_35 {dimension_numbers = #tpu.dot_dimension_numbers<[1], [0], [0], [1], [0, 0, 1, 1], [], []>} : vector<8x8xf32>, vector<8x8xf32>, vector<8x8xf32> -> vector<8x8xf32>
    %123 = vector.extract_strided_slice %86 {offsets = [0, 16], sizes = [8, 8], strides = [1, 1]} : vector<8x32xf32> to vector<8x8xf32>
    %124 = vector.extract_strided_slice %87 {offsets = [0, 16], sizes = [8, 8], strides = [1, 1]} : vector<8x32xf32> to vector<8x8xf32>
    %125 = vector.extract_strided_slice %88 {offsets = [0, 16], sizes = [8, 8], strides = [1, 1]} : vector<8x32xf32> to vector<8x8xf32>
    %cst_36 = arith.constant dense<0.000000e+00> : vector<8x8xf32>
    %126 = tpu.matmul %123, %124, %cst_36 {dimension_numbers = #tpu.dot_dimension_numbers<[1], [1], [0], [0], [0, 0, 1, 0], [], []>} : vector<8x8xf32>, vector<8x8xf32>, vector<8x8xf32> -> vector<8x8xf32>
    %cst_37 = arith.constant 0.353553385 : f32
    %127 = vector.broadcast %cst_37 : f32 to vector<8x8xf32>
    %128 = arith.mulf %126, %127 : vector<8x8xf32>
    %cst_38 = arith.constant dense<0xFF800000> : vector<8xf32>
    %129 = vector.multi_reduction <maximumf>, %128, %cst_38 [1] : vector<8x8xf32> to vector<8xf32>
    %130 = vector.shape_cast %129 : vector<8xf32> to vector<8x1xf32>
    %131 = vector.broadcast %130 : vector<8x1xf32> to vector<8x8xf32>
    %132 = arith.subf %128, %131 : vector<8x8xf32>
    %133 = math.exp %132 : vector<8x8xf32>
    %cst_39 = arith.constant dense<0.000000e+00> : vector<8xf32>
    %134 = vector.multi_reduction <add>, %133, %cst_39 [1] : vector<8x8xf32> to vector<8xf32>
    %135 = vector.shape_cast %134 : vector<8xf32> to vector<8x1xf32>
    %136 = tpu.reciprocal %135 : vector<8x1xf32> -> vector<8x1xf32>
    %137 = vector.broadcast %136 : vector<8x1xf32> to vector<8x8xf32>
    %138 = arith.mulf %133, %137 : vector<8x8xf32>
    %cst_40 = arith.constant dense<0.000000e+00> : vector<8x8xf32>
    %139 = tpu.matmul %138, %125, %cst_40 {dimension_numbers = #tpu.dot_dimension_numbers<[1], [0], [0], [1], [0, 0, 1, 1], [], []>} : vector<8x8xf32>, vector<8x8xf32>, vector<8x8xf32> -> vector<8x8xf32>
    %140 = vector.extract_strided_slice %86 {offsets = [0, 24], sizes = [8, 8], strides = [1, 1]} : vector<8x32xf32> to vector<8x8xf32>
    %141 = vector.extract_strided_slice %87 {offsets = [0, 24], sizes = [8, 8], strides = [1, 1]} : vector<8x32xf32> to vector<8x8xf32>
    %142 = vector.extract_strided_slice %88 {offsets = [0, 24], sizes = [8, 8], strides = [1, 1]} : vector<8x32xf32> to vector<8x8xf32>
    %cst_41 = arith.constant dense<0.000000e+00> : vector<8x8xf32>
    %143 = tpu.matmul %140, %141, %cst_41 {dimension_numbers = #tpu.dot_dimension_numbers<[1], [1], [0], [0], [0, 0, 1, 0], [], []>} : vector<8x8xf32>, vector<8x8xf32>, vector<8x8xf32> -> vector<8x8xf32>
    %cst_42 = arith.constant 0.353553385 : f32
    %144 = vector.broadcast %cst_42 : f32 to vector<8x8xf32>
    %145 = arith.mulf %143, %144 : vector<8x8xf32>
    %cst_43 = arith.constant dense<0xFF800000> : vector<8xf32>
    %146 = vector.multi_reduction <maximumf>, %145, %cst_43 [1] : vector<8x8xf32> to vector<8xf32>
    %147 = vector.shape_cast %146 : vector<8xf32> to vector<8x1xf32>
    %148 = vector.broadcast %147 : vector<8x1xf32> to vector<8x8xf32>
    %149 = arith.subf %145, %148 : vector<8x8xf32>
    %150 = math.exp %149 : vector<8x8xf32>
    %cst_44 = arith.constant dense<0.000000e+00> : vector<8xf32>
    %151 = vector.multi_reduction <add>, %150, %cst_44 [1] : vector<8x8xf32> to vector<8xf32>
    %152 = vector.shape_cast %151 : vector<8xf32> to vector<8x1xf32>
    %153 = tpu.reciprocal %152 : vector<8x1xf32> -> vector<8x1xf32>
    %154 = vector.broadcast %153 : vector<8x1xf32> to vector<8x8xf32>
    %155 = arith.mulf %150, %154 : vector<8x8xf32>
    %cst_45 = arith.constant dense<0.000000e+00> : vector<8x8xf32>
    %156 = tpu.matmul %155, %142, %cst_45 {dimension_numbers = #tpu.dot_dimension_numbers<[1], [0], [0], [1], [0, 0, 1, 1], [], []>} : vector<8x8xf32>, vector<8x8xf32>, vector<8x8xf32> -> vector<8x8xf32>
    %157 = tpu.concatenate %105, %122, %139, %156 in 1 : vector<8x8xf32>, vector<8x8xf32>, vector<8x8xf32>, vector<8x8xf32> -> vector<8x32xf32>
    %158 = tpu.concatenate %104, %121, %138, %155 in 1 : vector<8x8xf32>, vector<8x8xf32>, vector<8x8xf32>, vector<8x8xf32> -> vector<8x32xf32>
    %159 = vector.shape_cast %158 : vector<8x32xf32> to vector<1x8x32xf32>
    %160 = tpu.concatenate %85, %159 in 0 : vector<1x8x32xf32>, vector<1x8x32xf32> -> vector<2x8x32xf32>
    %c0_46 = arith.constant 0 : index
    %c0_47 = arith.constant 0 : index
    %c0_48 = arith.constant 0 : index
    %161 = vector.load %arg11[%c0_46, %c0_47, %c0_48] : memref<2x8x32xf32, #tpu.memory_space<vmem>>, vector<2x8x32xf32>
    tpu.vector_store %arg11[%c0_46, %c0_47, %c0_48], %160 {strides = array<i32>} : memref<2x8x32xf32, #tpu.memory_space<vmem>>, vector<2x8x32xf32>,
    %162 = tpu.concatenate %83, %157 in 0 : vector<8x32xf32>, vector<8x32xf32> -> vector<16x32xf32>
    %c0_49 = arith.constant 0 : index
    %c0_50 = arith.constant 0 : index
    %163 = vector.load %arg4[%c0_49, %c0_50] : memref<32x32xf32, #tpu.memory_space<vmem>>, vector<32x32xf32>
    %cst_51 = arith.constant dense<0.000000e+00> : vector<16x32xf32>
    %164 = tpu.matmul %162, %163, %cst_51 {dimension_numbers = #tpu.dot_dimension_numbers<[1], [0], [0], [1], [0, 0, 1, 1], [], []>} : vector<16x32xf32>, vector<32x32xf32>, vector<16x32xf32> -> vector<16x32xf32>
    %c0_52 = arith.constant 0 : index
    %c0_53 = arith.constant 0 : index
    %165 = vector.load %arg5[%c0_52, %c0_53] : memref<1x32xf32, #tpu.memory_space<vmem>>, vector<1x32xf32>
    %166 = vector.shape_cast %165 : vector<1x32xf32> to vector<32xf32>
    %167 = vector.shape_cast %166 : vector<32xf32> to vector<1x32xf32>
    %168 = vector.broadcast %167 : vector<1x32xf32> to vector<16x32xf32>
    %169 = arith.addf %164, %168 : vector<16x32xf32>
    %170 = arith.addf %169, %1 : vector<16x32xf32>
    %cst_54 = arith.constant dense<0.000000e+00> : vector<16xf32>
    %171 = vector.multi_reduction <add>, %170, %cst_54 [1] : vector<16x32xf32> to vector<16xf32>
    %172 = vector.shape_cast %171 : vector<16xf32> to vector<16x1xf32>
    %cst_55 = arith.constant 3.200000e+01 : f32
    %173 = vector.broadcast %cst_55 : f32 to vector<16x1xf32>
    %174 = arith.divf %172, %173 : vector<16x1xf32>
    %175 = vector.broadcast %174 : vector<16x1xf32> to vector<16x32xf32>
    %176 = arith.subf %170, %175 : vector<16x32xf32>
    %177 = arith.mulf %176, %176 : vector<16x32xf32>
    %cst_56 = arith.constant dense<0.000000e+00> : vector<16xf32>
    %178 = vector.multi_reduction <add>, %177, %cst_56 [1] : vector<16x32xf32> to vector<16xf32>
    %179 = vector.shape_cast %178 : vector<16xf32> to vector<16x1xf32>
    %cst_57 = arith.constant 3.200000e+01 : f32
    %180 = vector.broadcast %cst_57 : f32 to vector<16x1xf32>
    %181 = arith.divf %179, %180 : vector<16x1xf32>
    %182 = vector.broadcast %174 : vector<16x1xf32> to vector<16x32xf32>
    %183 = arith.subf %170, %182 : vector<16x32xf32>
    %cst_58 = arith.constant 9.99999974E-6 : f32
    %184 = vector.broadcast %cst_58 : f32 to vector<16x1xf32>
    %185 = arith.addf %181, %184 : vector<16x1xf32>
    %186 = math.rsqrt %185 : vector<16x1xf32>
    %187 = vector.broadcast %186 : vector<16x1xf32> to vector<16x32xf32>
    %188 = arith.mulf %183, %187 : vector<16x32xf32>
    %c0_59 = arith.constant 0 : index
    %c0_60 = arith.constant 0 : index
    %189 = vector.load %arg6[%c0_59, %c0_60] : memref<1x32xf32, #tpu.memory_space<vmem>>, vector<1x32xf32>
    %190 = vector.shape_cast %189 : vector<1x32xf32> to vector<32xf32>
    %191 = vector.shape_cast %190 : vector<32xf32> to vector<1x32xf32>
    %192 = vector.broadcast %191 : vector<1x32xf32> to vector<16x32xf32>
    %193 = arith.mulf %188, %192 : vector<16x32xf32>
    %c0_61 = arith.constant 0 : index
    %c0_62 = arith.constant 0 : index
    %194 = vector.load %arg7[%c0_61, %c0_62] : memref<1x32xf32, #tpu.memory_space<vmem>>, vector<1x32xf32>
    %195 = vector.shape_cast %194 : vector<1x32xf32> to vector<32xf32>
    %196 = vector.shape_cast %195 : vector<32xf32> to vector<1x32xf32>
    %197 = vector.broadcast %196 : vector<1x32xf32> to vector<16x32xf32>
    %198 = arith.addf %193, %197 : vector<16x32xf32>
    %199 = vector.shape_cast %198 : vector<16x32xf32> to vector<2x8x32xf32>
    %cst_63 = arith.constant dense<0.000000e+00> : vector<2x32xf32>
    %200 = vector.multi_reduction <add>, %199, %cst_63 [1] : vector<2x8x32xf32> to vector<2x32xf32>
    %cst_64 = arith.constant 8.000000e+00 : f32
    %201 = vector.broadcast %cst_64 : f32 to vector<2x32xf32>
    %202 = arith.divf %200, %201 : vector<2x32xf32>
    %c0_65 = arith.constant 0 : index
    %c0_66 = arith.constant 0 : index
    %203 = vector.load %arg8[%c0_65, %c0_66] : memref<1x32xf32, #tpu.memory_space<vmem>>, vector<1x32xf32>
    %204 = vector.shape_cast %203 : vector<1x32xf32> to vector<32xf32>
    %205 = vector.shape_cast %204 : vector<32xf32> to vector<1x32xf32>
    %206 = vector.broadcast %205 : vector<1x32xf32> to vector<2x32xf32>
    %207 = arith.mulf %202, %206 : vector<2x32xf32>
    %cst_67 = arith.constant dense<0.000000e+00> : vector<2xf32>
    %208 = vector.multi_reduction <add>, %207, %cst_67 [1] : vector<2x32xf32> to vector<2xf32>
    %209 = vector.shape_cast %208 : vector<2xf32> to vector<2x1xf32>
    %c0_68 = arith.constant 0 : index
    %c0_69 = arith.constant 0 : index
    %210 = vector.load %arg9[%c0_68, %c0_69] : memref<1x1xf32, #tpu.memory_space<vmem>>, vector<1x1xf32>
    %211 = vector.shape_cast %210 : vector<1x1xf32> to vector<1xf32>
    %212 = vector.shape_cast %211 : vector<1xf32> to vector<1x1xf32>
    %213 = vector.broadcast %212 : vector<1x1xf32> to vector<2x1xf32>
    %214 = arith.addf %209, %213 : vector<2x1xf32>
    %c0_70 = arith.constant 0 : index
    %c0_71 = arith.constant 0 : index
    %c0_72 = arith.constant 0 : index
    %215 = vector.load %arg10[%c0_70, %c0_71, %c0_72] : memref<1x2x1xf32, #tpu.memory_space<vmem>>, vector<1x2x1xf32>
    %216 = vector.shape_cast %215 : vector<1x2x1xf32> to vector<2x1xf32>
    %217 = vector.shape_cast %214 : vector<2x1xf32> to vector<1x2x1xf32>
    tpu.vector_store %arg10[%c0_70, %c0_71, %c0_72], %217 {strides = array<i32>} : memref<1x2x1xf32, #tpu.memory_space<vmem>>, vector<1x2x1xf32>,
    return
  }
  func.func @transform_0(%arg0: i32) -> (i32, i32, i32) {
    %c0_i32 = arith.constant 0 : i32
    %c0_i32_0 = arith.constant 0 : i32
    %c0_i32_1 = arith.constant 0 : i32
    return %arg0, %c0_i32, %c0_i32_0 : i32, i32, i32
  }
  func.func @transform_1(%arg0: i32) -> (i32, i32) {
    %c0_i32 = arith.constant 0 : i32
    %c0_i32_0 = arith.constant 0 : i32
    %c0_i32_1 = arith.constant 0 : i32
    return %c0_i32, %c0_i32_0 : i32, i32
  }
  func.func @transform_2(%arg0: i32) -> (i32, i32) {
    %c0_i32 = arith.constant 0 : i32
    %c0_i32_0 = arith.constant 0 : i32
    %c0_i32_1 = arith.constant 0 : i32
    return %c0_i32, %c0_i32_0 : i32, i32
  }
  func.func @transform_3(%arg0: i32) -> (i32, i32) {
    %c0_i32 = arith.constant 0 : i32
    %c0_i32_0 = arith.constant 0 : i32
    %c0_i32_1 = arith.constant 0 : i32
    return %c0_i32, %c0_i32_0 : i32, i32
  }
  func.func @transform_4(%arg0: i32) -> (i32, i32) {
    %c0_i32 = arith.constant 0 : i32
    %c0_i32_0 = arith.constant 0 : i32
    %c0_i32_1 = arith.constant 0 : i32
    return %c0_i32, %c0_i32_0 : i32, i32
  }
  func.func @transform_5(%arg0: i32) -> (i32, i32) {
    %c0_i32 = arith.constant 0 : i32
    %c0_i32_0 = arith.constant 0 : i32
    %c0_i32_1 = arith.constant 0 : i32
    return %c0_i32, %c0_i32_0 : i32, i32
  }
  func.func @transform_6(%arg0: i32) -> (i32, i32) {
    %c0_i32 = arith.constant 0 : i32
    %c0_i32_0 = arith.constant 0 : i32
    %c0_i32_1 = arith.constant 0 : i32
    return %c0_i32, %c0_i32_0 : i32, i32
  }
  func.func @transform_7(%arg0: i32) -> (i32, i32) {
    %c0_i32 = arith.constant 0 : i32
    %c0_i32_0 = arith.constant 0 : i32
    %c0_i32_1 = arith.constant 0 : i32
    return %c0_i32, %c0_i32_0 : i32, i32
  }
  func.func @transform_8(%arg0: i32) -> (i32, i32) {
    %c0_i32 = arith.constant 0 : i32
    %c0_i32_0 = arith.constant 0 : i32
    %c0_i32_1 = arith.constant 0 : i32
    return %c0_i32, %c0_i32_0 : i32, i32
  }
  func.func @transform_9(%arg0: i32) -> (i32, i32, i32) {
    %c0_i32 = arith.constant 0 : i32
    %c0_i32_0 = arith.constant 0 : i32
    %c0_i32_1 = arith.constant 0 : i32
    return %arg0, %c0_i32, %c0_i32_0 : i32, i32, i32
  }
  func.func @transform_10(%arg0: i32) -> (i32, i32, i32) {
    %c0_i32 = arith.constant 0 : i32
    %c0_i32_0 = arith.constant 0 : i32
    %c0_i32_1 = arith.constant 0 : i32
    return %arg0, %c0_i32, %c0_i32_0 : i32, i32, i32
  }
}

</mosaic_0001>

<bundles_post_ra>
// kernel: tpu_custom_call.1
= control target key start
LH: loop header
LB: loop body
LE: loop exit
PB: predicated region body
PF: predicated region fallthrough
CT: control target
= control target key end

     0   :  { %s2442_s0 = inlined_call_operand.hbm [shape: f32[2,8,32], index: 0, kind: input, shape index: {}]   ;;  %s2443_s1 = inlined_call_operand.hbm [shape: f32[32,96], index: 1, kind: input, shape index: {}]   ;;  %s2444_s2 = inlined_call_operand.vmem [shape: f32[1,96], index: 2, kind: input, shape index: {}]   ;;  %s2445_s3 = inlined_call_operand.hbm [shape: f32[32,32], index: 3, kind: input, shape index: {}]   ;;  %s2446_s4 = inlined_call_operand.vmem [shape: f32[1,32], index: 4, kind: input, shape index: {}]   ;;  %s2447_s5 = inlined_call_operand.vmem [shape: f32[1,32], index: 5, kind: input, shape index: {}]   ;;  %s2448_s6 = inlined_call_operand.vmem [shape: f32[1,32], index: 6, kind: input, shape index: {}]   ;;  %s2449_s7 = inlined_call_operand.vmem [shape: f32[1,32], index: 7, kind: input, shape index: {}]   ;;  %s2450_s8 = inlined_call_operand.<no memory space> [shape: f32[1,1], index: 8, kind: input, shape index: {}]   ;;  %s2451_s9 = inlined_call_operand.vmem [shape: f32[1,2,1], index: 9, kind: output, shape index: {0}]   ;;  %s2452_s10 = inlined_call_operand.hbm [shape: f32[2,8,32], index: 10, kind: output, shape index: {1}]  }
   0x1   :  { %v16_v0 = vstv %s2450_s8 }
   0x2   :  { %17 = vst [vmem:[#allocation2] sm:$0x1] %v16_v0 }
   0x3   :  { %18 = vsyncpa [#allocation4], 0 }
   0x4   :  { %19 = vsyncpa [#allocation7], 0 }
   0x5   :  { %20 = vsyncpa [#allocation5], 0  ;;  %s2088_s15 = smov [#allocation6]   ;;  %s2089_s17 = smov [#allocation3]  }
   0x6   :  { %s38_s16 = sshll.u32 %s2088_s15, 4  ;;  %s26_s18 = sshll.u32 %s2089_s17, 4  ;;  %s39_s16 = int_to_ptr.vmem [resolvable:$true] %s38_s16  ;;  %s27_s18 = int_to_ptr.vmem [resolvable:$true] %s26_s18 }
   0x7   :  { %s2010_s19 = scalar_lea.vmem %s39_s16, 512  ;;  %p2015_p1 = scmp.lt.s32.totalorder %s39_s16, %s39_s16 }
   0x8   :  { %p2011_p0 = scmp.ne.s32.totalorder %s39_s16, %s2010_s19  ;;  %p2016_p2 = scmp.lt.s32.totalorder %s2010_s19, %s2010_s19 }
   0xa   :  { %p2017_p3 = por %p2016_p2, %p2015_p1 }
   0xc   :  { %p2018_p4 = pnand %p2017_p3, %p2011_p0 }
   0xe   :  { %2021 = shalt.err (!%p2018_p4)
}
   0xf   :  { %s2090_s20 = smov 128   ;;  %s2091_s21 = smov 8  }
  0x10   :  { %44 = dma.hbm_to_vmem [thread:$0]  %s2443_s1, 512, %s39_s16, [#allocation7], %s2090_s20, %s2090_s20, %s2091_s21  }
  0x11   :  { %s2030_s23 = scalar_lea.vmem %s27_s18, 256  ;;  %p2035_p6 = scmp.lt.s32.totalorder %s27_s18, %s27_s18 }
  0x12   :  { %p2031_p5 = scmp.ne.s32.totalorder %s27_s18, %s2030_s23  ;;  %p2036_p7 = scmp.lt.s32.totalorder %s2030_s23, %s2030_s23 }
  0x14   :  { %p2037_p8 = por %p2036_p7, %p2035_p6 }
  0x16   :  { %p2038_p9 = pnand %p2037_p8, %p2031_p5 }
  0x18   :  { %2041 = shalt.err (!%p2038_p9)
}
  0x19   :  { %32 = dma.hbm_to_vmem [thread:$0]  %s2442_s0, 256, %s27_s18, [#allocation4], %s2090_s20, %s2090_s20, %s2091_s21  }
  0x1a   :  { %s2092_s26 = smov [#allocation8]  }
  0x1b   :  { %s52_s27 = sshll.u32 %s2092_s26, 4  ;;  %s53_s27 = int_to_ptr.vmem [resolvable:$true] %s52_s27 }
  0x1c   :  { %s2050_s28 = scalar_lea.vmem %s53_s27, 512  ;;  %p2055_p11 = scmp.lt.s32.totalorder %s53_s27, %s53_s27 }
  0x1d   :  { %p2051_p10 = scmp.ne.s32.totalorder %s53_s27, %s2050_s28  ;;  %p2056_p12 = scmp.lt.s32.totalorder %s2050_s28, %s2050_s28 }
  0x1f   :  { %p2057_p13 = por %p2056_p12, %p2055_p11 }
  0x21   :  { %p2058_p0 = pnand %p2057_p13, %p2051_p10 }
  0x23   :  { %2061 = shalt.err (!%p2058_p0)
}
  0x24   :  { %58 = dma.hbm_to_vmem [thread:$0]  %s2445_s3, 512, %s53_s27, [#allocation7], %s2090_s20, %s2090_s20, %s2091_s21  }
  0x25   :  { %2082 = dma.done.wait [#allocation4], 256  }
  0x26   :  { %2083 = vsyncadd [#allocation4], 4294967040 }
  0x27   :  { %2084 = dma.done.wait [#allocation7], 1024  }
  0x28   :  { %2085 = vsyncadd [#allocation7], 4294966272  ;;  %vm91_vm0 = vcmask 261120   ;;  %v83_v1 = vld [vmem:[#allocation6 + $0x18] sm:$0xff]  ;;  %v82_v2 = vld [vmem:[#allocation6 + $0x10] sm:$0xff]  ;;  %v2093_v7 = vmov 0.0  }
  0x29   :  { %1843 = vmatprep.subr.mxu0 %v83_v1  ;;  %v2185_v3 = vld [vmem:[#allocation3] sm:$0xff]  ;;  %v81_v4 = vld [vmem:[#allocation6 + $0x8] sm:$0xff]  ;;  %v80_v5 = vld [vmem:[#allocation6] sm:$0xff]  ;;  %1854 = vmatprep.subr.mxu1 %v2093_v7  ;;  %vm2094_vm1 = vmmov 0   ;;  %s2095_s30 = smov 64   ;;  %s2096_s11 = smov 96  }
  0x2a   :  { %1844 = vmatpush3.msra.mxu0 %v83_v1  ;;  %1851 = vmatprep.mubr.msk.f32.mxu0 %vm91_vm0, %v2185_v3  ;;  %v2189_v6 = vld [vmem:[#allocation3 + $0x8] sm:$0xff]  ;;  %v1765_v8 = vld [vmem:[%s2444_s2] ss:$0 sm:$0xff]  ;;  %s2097_s12 = smov 88   ;;  %s2098_s13 = smov 120   ;;  %vm176_vm2 = vcmask 64512  }
  0x2b   :  { %1845 = vmatprep.subr.mxu0 %v82_v2  ;;  %1856 = vmatprep.mubr.msk.f32.mxu1 %vm2094_vm1, %v2093_v7  ;;  %s2099_s2 = smov 80   ;;  %s2100_s14 = smov 112   ;;  %vm850_vm3 = vcmask 130048   ;;  %vm852_vm4 = vcmask 195584   ;;  %vm1726_vm5 = vcmask 1041409   ;;  %vm1729_vm6 = vcmask 254976  }
  0x2c   :  { %1846 = vmatpush3.msra.mxu0 %v82_v2  ;;  %s2101_s15 = smov 72   ;;  %s2102_s16 = smov 104  }
  0x2d   :  { %1847 = vmatprep.subr.mxu0 %v81_v4  ;;  %s2103_s17 = smov 48   ;;  %s2104_s18 = smov 56  }
  0x2e   :  { %1848 = vmatpush3.msra.mxu0 %v81_v4  ;;  %s2105_s19 = smov 40   ;;  %s2106_s8 = smov 16  }
  0x2f   :  { %1849 = vmatprep.subr.mxu0 %v80_v5  ;;  %s2107_s22 = smov 24   ;;  %s2108_s28 = smov [#allocation9]  }
  0x30   :  { %1850 = vmatpush3.msra.mxu0 %v80_v5  ;;  %s1750_s1 = sshll.u32 %s2108_s28, 4  ;;  %s1751_s1 = int_to_ptr.vmem [resolvable:$true] %s1750_s1 }
  0x31   :  { %1852 = vmatmul.mubr.msk.f32.vlgmr.msra.gmra.mxu0 %vm91_vm0, %v2189_v6  ;;  %1874 = vmatprep.subr.mxu0 %v2093_v7  ;;  %s2062_s29 = scalar_lea.vmem %s1751_s1, 256  ;;  %p2067_p2 = scmp.lt.s32.totalorder %s1751_s1, %s1751_s1 }
  0x32   :  { %1876 = vmatprep.mubr.msk.f32.mxu0 %vm2094_vm1, %v2093_v7  ;;  %p2063_p1 = scmp.ne.s32.totalorder %s1751_s1, %s2062_s29  ;;  %p2068_p3 = scmp.lt.s32.totalorder %s2062_s29, %s2062_s29 }
  0x34   :  { %p2069_p4 = por %p2068_p3, %p2067_p2 }
  0x36   :  { %p2070_p5 = pnand %p2069_p4, %p2063_p1 }
  0xf1   :  { %v1853_v9 = vpop.f32.mrf.mxu0 }
  0xf2   :  { %v2202_v10 = vadd.f32 %v1853_v9, %v1765_v8 }
  0xf3   :  { %v164_v11 = vpop.f32.mrf.mxu0 }
  0xf4   :  { %v2204_v12 = vadd.f32 %v1765_v8, %v164_v11 }
  0xf6   :  { %263 = vrot.lane.b32.xlu1 %v2204_v12, %s2095_s30  ;;  %174 = vrot.lane.b32.xlu0 %v2204_v12, %s2096_s11 }
  0xfa   :  { %341 = vrot.lane.b32.xlu1 %v2204_v12, %s2097_s12 }
  0xfe   :  { %339 = vrot.lane.b32.xlu1 %v2204_v12, %s2098_s13 }
 0x102   :  { %507 = vrot.lane.b32.xlu1 %v2204_v12, %s2099_s2 }
 0x106   :  { %505 = vrot.lane.b32.xlu1 %v2204_v12, %s2100_s14 }
 0x168   :  { %v264_v13 = vpop.permute.xlu1 %263  ;;  %v175_v14 = vpop.permute.xlu0 %174 }
 0x169   :  { %1855 = vmatpush3.xpose.msk.msra.mxu1 %vm176_vm2, %v175_v14 }
 0x16a   :  { %1859 = vmatprep.subr.mxu1 %v2093_v7 }
 0x16c   :  { %v342_v15 = vpop.permute.xlu1 %341  ;;  %1857 = vmatmul.mubr.msk.f32.vlgmr.msra.gmra.mxu1 %vm176_vm2, %v2204_v12 }
 0x16d   :  { %1860 = vmatpush3.msra.mxu1 %v264_v13  ;;  %1861 = vmatprep.mubr.msk.f32.mxu1 %vm2094_vm1, %v2093_v7 }
 0x16e   :  { %1864 = vmatprep.subr.mxu1 %v2093_v7 }
 0x170   :  { %v340_v16 = vpop.permute.xlu1 %339 }
 0x174   :  { %v508_v17 = vpop.permute.xlu1 %507 }
 0x175   :  { %1875 = vmatpush3.xpose.msk.msra.mxu0 %vm176_vm2, %v508_v17 }
 0x176   :  { %1884 = vmatprep.subr.mxu0 %v2093_v7 }
 0x178   :  { %v506_v18 = vpop.permute.xlu1 %505 }
 0x179   :  { %1877 = vmatmul.mubr.msk.f32.vlgmr.msra.gmra.mxu0 %vm176_vm2, %v506_v18 }
 0x17a   :  { %1886 = vmatprep.mubr.msk.f32.mxu0 %vm2094_vm1, %v2093_v7 }
 0x22c   :  { %v247_v19 = vpop.f32.mrf.mxu1 }
 0x22d   :  { %v251_v20 = vmul.f32 0.35355338, %v247_v19 }
 0x22e   :  { %v1858_v21 = vpop.f32.mrf.mxu1 }
 0x22f   :  { %v252_v22 = vsel %vm176_vm2, %v251_v20, -inf }
 0x230   :  { %253 = vmax.xlane.f32.xlu0 %v252_v22 }
 0x239   :  { %v579_v23 = vpop.f32.mrf.mxu0 }
 0x23a   :  { %v583_v25 = vmul.f32 0.35355338, %v579_v23 }
 0x23b   :  { %v1878_v24 = vpop.f32.mrf.mxu0 }
 0x23c   :  { %v584_v26 = vsel %vm176_vm2, %v583_v25, -inf }
 0x246   :  { %673 = vrot.lane.b32.xlu0 %v2204_v12, %s2101_s15 }
 0x24a   :  { %1197 = vrot.lane.b32.xlu0 %v2202_v10, %s2100_s14 }
 0x24e   :  { %1363 = vrot.lane.b32.xlu0 %v2202_v10, %s2102_s16 }
 0x26d   :  { %585 = vmax.xlane.f32.xlu0 %v584_v26 }
 0x2b9   :  { %v254_v27 = vpop.xlane.xlu0 %253 }
 0x2ba   :  { %v255_v28 = vsub.f32 %v251_v20, %v254_v27 }
 0x2bc   :  { %v256_v29 = vmul.f32 1.442695, %v255_v28 }
 0x2bd   :  { %v674_v30 = vpop.permute.xlu0 %673 }
 0x2be   :  { %1966 = vpow2.f32 %v256_v29  ;;  %1885 = vmatpush3.xpose.msk.msra.mxu0 %vm176_vm2, %v674_v30 }
 0x2bf   :  { %1894 = vmatprep.subr.mxu0 %v2093_v7 }
 0x2c1   :  { %v1198_v41 = vpop.permute.xlu0 %1197 }
 0x2c5   :  { %v1364_v43 = vpop.permute.xlu0 %1363 }
 0x2cb   :  { %v1967_v31 = vpop.eup %1966 }
 0x2cc   :  { %v258_v32 = vsel %vm176_vm2, %v1967_v31, 0.0 }
 0x2cd   :  { %259 = vadd.xlane.f32.xlu1 %v258_v32 }
 0x2de   :  { %671 = vrot.lane.b32.xlu1 %v2204_v12, %s2102_s16 }
 0x2e2   :  { %867 = vrot.lane.b32.xlu1 %v2202_v10, %s2096_s11 }
 0x2e6   :  { %1033 = vrot.lane.b32.xlu1 %v2202_v10, %s2097_s12 }
 0x2ea   :  { %1031 = vrot.lane.b32.xlu1 %v2202_v10, %s2098_s13 }
 0x2ee   :  { %1199 = vrot.lane.b32.xlu1 %v2202_v10, %s2099_s2 }
 0x2f2   :  { %1365 = vrot.lane.b32.xlu1 %v2202_v10, %s2101_s15 }
 0x2f6   :  { %v586_v47 = vpop.xlane.xlu0 %585 }
 0x2f7   :  { %v587_v49 = vsub.f32 %v583_v25, %v586_v47 }
 0x2f9   :  { %v588_v52 = vmul.f32 1.442695, %v587_v49 }
 0x356   :  { %v260_v33 = vpop.xlane.xlu1 %259 }
 0x357   :  { %1968 = vrcp.f32 %v260_v33 }
 0x358   :  { %1970 = vpow2.f32 %v588_v52 }
 0x35a   :  { %v672_v34 = vpop.permute.xlu1 %671 }
 0x35b   :  { %1887 = vmatmul.mubr.msk.f32.vlgmr.msra.gmra.mxu0 %vm176_vm2, %v672_v34 }
 0x35c   :  { %1896 = vmatprep.mubr.msk.f32.mxu0 %vm2094_vm1, %v2093_v7 }
 0x35e   :  { %v868_v35 = vpop.permute.xlu1 %867 }
 0x35f   :  { %1895 = vmatpush3.xpose.msk.msra.mxu0 %vm176_vm2, %v868_v35 }
 0x360   :  { %1904 = vmatprep.subr.mxu0 %v2093_v7 }
 0x362   :  { %v1034_v36 = vpop.permute.xlu1 %1033  ;;  %1897 = vmatmul.mubr.msk.f32.vlgmr.msra.gmra.mxu0 %vm176_vm2, %v2202_v10 }
 0x363   :  { %1905 = vmatpush3.xpose.msk.msra.mxu0 %vm176_vm2, %v1034_v36  ;;  %1906 = vmatprep.mubr.msk.f32.mxu0 %vm2094_vm1, %v2093_v7 }
 0x364   :  { %v1969_v37 = vpop.eup %1968  ;;  %1914 = vmatprep.subr.mxu0 %v2093_v7 }
 0x365   :  { %v2258_v38 = vmul.f32 %v1969_v37, %v1967_v31  ;;  %v2289_v13 = vpop.eup %1970 }
 0x366   :  { %v1032_v39 = vpop.permute.xlu1 %1031 }
 0x367   :  { %1862 = vmatmul.mubr.msk.f32.vlgmr.msra.gmra.mxu1 %vm176_vm2, %v2258_v38  ;;  %1907 = vmatmul.mubr.msk.f32.vlgmr.msra.gmra.mxu0 %vm176_vm2, %v1032_v39 }
 0x368   :  { %1865 = vmatpush3.xpose.msk.msra.mxu1 %vm176_vm2, %v342_v15  ;;  %1866 = vmatprep.mubr.msk.f32.mxu1 %vm2094_vm1, %v2093_v7  ;;  %v590_v15 = vsel %vm176_vm2, %v2289_v13, 0.0 }
 0x369   :  { %1916 = vmatprep.mubr.msk.f32.mxu0 %vm2094_vm1, %v2093_v7  ;;  %1869 = vmatprep.subr.mxu1 %v2093_v7 }
 0x36a   :  { %v1200_v40 = vpop.permute.xlu1 %1199 }
 0x36b   :  { %1867 = vmatmul.mubr.msk.f32.vlgmr.msra.gmra.mxu1 %vm176_vm2, %v340_v16  ;;  %1915 = vmatpush3.xpose.msk.msra.mxu0 %vm176_vm2, %v1200_v40 }
 0x36c   :  { %1924 = vmatprep.subr.mxu0 %v2093_v7  ;;  %1871 = vmatprep.mubr.msk.f32.mxu1 %vm2094_vm1, %v2093_v7 }
 0x36e   :  { %v1366_v42 = vpop.permute.xlu1 %1365  ;;  %1917 = vmatmul.mubr.msk.f32.vlgmr.msra.gmra.mxu0 %vm176_vm2, %v1198_v41 }
 0x36f   :  { %1925 = vmatpush3.xpose.msk.msra.mxu0 %vm176_vm2, %v1366_v42  ;;  %1926 = vmatprep.mubr.msk.f32.mxu0 %vm2094_vm1, %v2093_v7 }
 0x372   :  { %1927 = vmatmul.mubr.msk.f32.vlgmr.msra.gmra.mxu0 %vm176_vm2, %v1364_v43 }
 0x41b   :  { %v745_v44 = vpop.f32.mrf.mxu0 }
 0x41c   :  { %v749_v45 = vmul.f32 0.35355338, %v745_v44 }
 0x41d   :  { %v1888_v46 = vpop.f32.mrf.mxu0 }
 0x41e   :  { %v750_v48 = vsel %vm176_vm2, %v749_v45, -inf }
 0x41f   :  { %751 = vmax.xlane.f32.xlu0 %v750_v48 }
 0x422   :  { %v939_v50 = vpop.f32.mrf.mxu0 }
 0x423   :  { %v943_v62 = vmul.f32 0.35355338, %v939_v50 }
 0x424   :  { %v1898_v51 = vpop.f32.mrf.mxu0 }
 0x425   :  { %v944_v5 = vsel %vm176_vm2, %v943_v62, -inf }
 0x427   :  { %v2280_v53 = vpop.f32.mrf.mxu1  ;;  %v1105_v54 = vpop.f32.mrf.mxu0 }
 0x428   :  { %v1109_v55 = vmul.f32 0.35355338, %v1105_v54 }
 0x429   :  { %v1863_v56 = vpop.f32.mrf.mxu1  ;;  %v1908_v57 = vpop.f32.mrf.mxu0 }
 0x42a   :  { %v1110_v58 = vsel %vm176_vm2, %v1109_v55, -inf }
 0x42b   :  { %1111 = vmax.xlane.f32.xlu0 %v1110_v58  ;;  %v413_v59 = vpop.f32.mrf.mxu1 }
 0x42c   :  { %v2283_v60 = vmul.f32 0.35355338, %v413_v59 }
 0x42d   :  { %v1868_v61 = vpop.f32.mrf.mxu1 }
 0x42e   :  { %v1271_v63 = vpop.f32.mrf.mxu0  ;;  %v418_v0 = vsel %vm176_vm2, %v2283_v60, -inf }
 0x42f   :  { %419 = vmax.xlane.f32.xlu1 %v418_v0  ;;  %v1275_v2 = vmul.f32 0.35355338, %v1271_v63 }
 0x430   :  { %v1918_v1 = vpop.f32.mrf.mxu0 }
 0x431   :  { %v1276_v14 = vsel %vm176_vm2, %v1275_v2, -inf }
 0x432   :  { %v1437_v4 = vpop.f32.mrf.mxu0 }
 0x433   :  { %v1441_v8 = vmul.f32 0.35355338, %v1437_v4  ;;  %945 = vmax.xlane.f32.xlu1 %v944_v5 }
 0x434   :  { %v1928_v9 = vpop.f32.mrf.mxu0 }
 0x435   :  { %v1442_v11 = vsel %vm176_vm2, %v1441_v8, -inf }
 0x436   :  { %1443 = vmax.xlane.f32.xlu0 %v1442_v11 }
 0x437   :  { %1277 = vmax.xlane.f32.xlu1 %v1276_v14 }
 0x43a   :  { %591 = vadd.xlane.f32.xlu0 %v590_v15 }
 0x4a8   :  { %v752_v16 = vpop.xlane.xlu0 %751 }
 0x4a9   :  { %v753_v17 = vsub.f32 %v749_v45, %v752_v16 }
 0x4ab   :  { %v754_v18 = vmul.f32 1.442695, %v753_v17 }
 0x4ad   :  { %1972 = vpow2.f32 %v754_v18  ;;  %v1561_v18 = vld [vmem:[#allocation8 + $0x18] sm:$0xff] }
 0x4ae   :  { %1934 = vmatprep.subr.mxu0 %v1561_v18 }
 0x4af   :  { %1935 = vmatpush3.msra.mxu0 %v1561_v18 }
 0x4b4   :  { %v1112_v19 = vpop.xlane.xlu0 %1111 }
 0x4b5   :  { %v1113_v20 = vsub.f32 %v1109_v55, %v1112_v19  ;;  %v1560_v19 = vld [vmem:[#allocation8 + $0x10] sm:$0xff] }
 0x4b6   :  { %1936 = vmatprep.subr.mxu0 %v1560_v19 }
 0x4b7   :  { %v1114_v21 = vmul.f32 1.442695, %v1113_v20  ;;  %1937 = vmatpush3.msra.mxu0 %v1560_v19 }
 0x4b8   :  { %v420_v22 = vpop.xlane.xlu1 %419 }
 0x4b9   :  { %1974 = vpow2.f32 %v1114_v21  ;;  %v421_v43 = vsub.f32 %v2283_v60, %v420_v22  ;;  %v1559_v21 = vld [vmem:[#allocation8 + $0x8] sm:$0xff]  ;;  %v1558_v22 = vld [vmem:[#allocation8] sm:$0xff] }
 0x4ba   :  { %v2294_v23 = vpop.eup %1972  ;;  %1938 = vmatprep.subr.mxu0 %v1559_v21 }
 0x4bb   :  { %v756_v24 = vsel %vm176_vm2, %v2294_v23, 0.0  ;;  %v422_v44 = vmul.f32 1.442695, %v421_v43  ;;  %1939 = vmatpush3.msra.mxu0 %v1559_v21  ;;  %v1796_v21 = vld [vmem:[%s2448_s6] ss:$0 sm:$0xff] }
 0x4bc   :  { %757 = vadd.xlane.f32.xlu1 %v756_v24  ;;  %v946_v25 = vpop.xlane.xlu1 %945  ;;  %1940 = vmatprep.subr.mxu0 %v1558_v22 }
 0x4bd   :  { %v947_v26 = vsub.f32 %v943_v62, %v946_v25  ;;  %1941 = vmatpush3.msra.mxu0 %v1558_v22 }
 0x4bf   :  { %v948_v27 = vmul.f32 1.442695, %v947_v26  ;;  %v1444_v28 = vpop.xlane.xlu0 %1443 }
 0x4c0   :  { %v1445_v29 = vsub.f32 %v1441_v8, %v1444_v28  ;;  %v1278_v30 = vpop.xlane.xlu1 %1277 }
 0x4c1   :  { %1976 = vpow2.f32 %v948_v27  ;;  %v1279_v31 = vsub.f32 %v1275_v2, %v1278_v30 }
 0x4c2   :  { %v1446_v32 = vmul.f32 1.442695, %v1445_v29 }
 0x4c3   :  { %v1280_v33 = vmul.f32 1.442695, %v1279_v31  ;;  %v592_v47 = vpop.xlane.xlu0 %591 }
 0x4c4   :  { %1978 = vpow2.f32 %v1446_v32 }
 0x4c5   :  { %1980 = vpow2.f32 %v1280_v33 }
 0x4c6   :  { %v2298_v34 = vpop.eup %1974  ;;  %1982 = vpow2.f32 %v422_v44 }
 0x4c7   :  { %v1116_v35 = vsel %vm176_vm2, %v2298_v34, 0.0 }
 0x4c8   :  { %1117 = vadd.xlane.f32.xlu1 %v1116_v35 }
 0x4ce   :  { %v2302_v36 = vpop.eup %1976 }
 0x4cf   :  { %v950_v37 = vsel %vm176_vm2, %v2302_v36, 0.0 }
 0x4d0   :  { %951 = vadd.xlane.f32.xlu0 %v950_v37 }
 0x4d1   :  { %v2306_v39 = vpop.eup %1978 }
 0x4d2   :  { %v2308_v40 = vpop.eup %1980  ;;  %v1448_v41 = vsel %vm176_vm2, %v2306_v39, 0.0 }
 0x4d3   :  { %1449 = vadd.xlane.f32.xlu1 %v1448_v41  ;;  %v1282_v42 = vsel %vm176_vm2, %v2308_v40, 0.0  ;;  %v1983_v45 = vpop.eup %1982 }
 0x4d4   :  { %1283 = vadd.xlane.f32.xlu0 %v1282_v42  ;;  %v424_v46 = vsel %vm176_vm2, %v1983_v45, 0.0 }
 0x4e4   :  { %595 = vrot.lane.b32.xlu1 %v2204_v12, %s2103_s17 }
 0x4ea   :  { %429 = vrot.lane.b32.xlu0 %v2204_v12, %s2104_s18 }
 0x4ee   :  { %955 = vrot.lane.b32.xlu0 %v2202_v10, %s2095_s30 }
 0x4f2   :  { %1287 = vrot.lane.b32.xlu0 %v2202_v10, %s2103_s17 }
 0x508   :  { %425 = vadd.xlane.f32.xlu1 %v424_v46 }
 0x519   :  { %761 = vrot.lane.b32.xlu1 %v2204_v12, %s2105_s19 }
 0x51d   :  { %1121 = vrot.lane.b32.xlu1 %v2202_v10, %s2104_s18 }
 0x521   :  { %1453 = vrot.lane.b32.xlu1 %v2202_v10, %s2105_s19 }
 0x545   :  { %v758_v51 = vpop.xlane.xlu1 %757 }
 0x551   :  { %v1118_v52 = vpop.xlane.xlu1 %1117 }
 0x559   :  { %v952_v48 = vpop.xlane.xlu0 %951 }
 0x55c   :  { %v1450_v54 = vpop.xlane.xlu1 %1449 }
 0x55d   :  { %v1284_v49 = vpop.xlane.xlu0 %1283 }
 0x560   :  { %v596_v55 = vpop.permute.xlu1 %595 }
 0x561   :  { %v430_v50 = vpop.permute.xlu0 %429 }
 0x562   :  { %1870 = vmatpush3.msra.mxu1 %v430_v50 }
 0x563   :  { %1879 = vmatprep.subr.mxu1 %v2093_v7 }
 0x565   :  { %v956_v63 = vpop.permute.xlu0 %955 }
 0x569   :  { %v1288_v8 = vpop.permute.xlu0 %1287 }
 0x591   :  { %v426_v56 = vpop.xlane.xlu1 %425 }
 0x592   :  { %1984 = vrcp.f32 %v426_v56 }
 0x593   :  { %1986 = vrcp.f32 %v592_v47 }
 0x594   :  { %1988 = vrcp.f32 %v758_v51 }
 0x595   :  { %1990 = vrcp.f32 %v952_v48  ;;  %v762_v60 = vpop.permute.xlu1 %761 }
 0x596   :  { %1992 = vrcp.f32 %v1118_v52 }
 0x597   :  { %1994 = vrcp.f32 %v1284_v49 }
 0x598   :  { %1996 = vrcp.f32 %v1450_v54 }
 0x599   :  { %v1122_v2 = vpop.permute.xlu1 %1121 }
 0x59f   :  { %v1985_v12 = vpop.eup %1984 }
 0x5a0   :  { %v2325_v57 = vmul.f32 %v1985_v12, %v1983_v45  ;;  %v1987_v10 = vpop.eup %1986 }
 0x5a1   :  { %v2333_v58 = vmul.f32 %v1987_v10, %v2289_v13  ;;  %v1989_v59 = vpop.eup %1988  ;;  %v1454_v13 = vpop.permute.xlu1 %1453 }
 0x5a2   :  { %1872 = vmatmul.mubr.msk.f32.vlgmr.msra.gmra.mxu1 %vm176_vm2, %v2325_v57  ;;  %v2341_v61 = vmul.f32 %v1989_v59, %v2294_v23  ;;  %v1991_v62 = vpop.eup %1990 }
 0x5a3   :  { %1880 = vmatpush3.msra.mxu1 %v596_v55  ;;  %1881 = vmatprep.mubr.msk.f32.mxu1 %vm2094_vm1, %v2093_v7  ;;  %v2349_v0 = vmul.f32 %v1991_v62, %v2302_v36  ;;  %v1993_v1 = vpop.eup %1992 }
 0x5a4   :  { %1889 = vmatprep.subr.mxu1 %v2093_v7  ;;  %v2357_v4 = vmul.f32 %v1993_v1, %v2298_v34  ;;  %v1995_v5 = vpop.eup %1994 }
 0x5a5   :  { %v2365_v9 = vmul.f32 %v1995_v5, %v2308_v40  ;;  %v1997_v11 = vpop.eup %1996 }
 0x5a6   :  { %1882 = vmatmul.mubr.msk.f32.vlgmr.msra.gmra.mxu1 %vm176_vm2, %v2333_v58  ;;  %v2372_v14 = vmul.f32 %v1997_v11, %v2306_v39 }
 0x5a7   :  { %1890 = vmatpush3.msra.mxu1 %v762_v60  ;;  %1891 = vmatprep.mubr.msk.f32.mxu1 %vm2094_vm1, %v2093_v7 }
 0x5a8   :  { %1899 = vmatprep.subr.mxu1 %v2093_v7 }
 0x5aa   :  { %1892 = vmatmul.mubr.msk.f32.vlgmr.msra.gmra.mxu1 %vm176_vm2, %v2341_v61 }
 0x5ab   :  { %1900 = vmatpush3.msra.mxu1 %v956_v63  ;;  %1901 = vmatprep.mubr.msk.f32.mxu1 %vm2094_vm1, %v2093_v7 }
 0x5ac   :  { %1909 = vmatprep.subr.mxu1 %v2093_v7 }
 0x5ae   :  { %1902 = vmatmul.mubr.msk.f32.vlgmr.msra.gmra.mxu1 %vm176_vm2, %v2349_v0 }
 0x5af   :  { %1910 = vmatpush3.msra.mxu1 %v1122_v2  ;;  %1911 = vmatprep.mubr.msk.f32.mxu1 %vm2094_vm1, %v2093_v7 }
 0x5b0   :  { %1919 = vmatprep.subr.mxu1 %v2093_v7 }
 0x5b2   :  { %1912 = vmatmul.mubr.msk.f32.vlgmr.msra.gmra.mxu1 %vm176_vm2, %v2357_v4 }
 0x5b3   :  { %1920 = vmatpush3.msra.mxu1 %v1288_v8  ;;  %1921 = vmatprep.mubr.msk.f32.mxu1 %vm2094_vm1, %v2093_v7 }
 0x5b4   :  { %1929 = vmatprep.subr.mxu1 %v2093_v7 }
 0x5b6   :  { %1922 = vmatmul.mubr.msk.f32.vlgmr.msra.gmra.mxu1 %vm176_vm2, %v2365_v9 }
 0x5b7   :  { %1930 = vmatpush3.msra.mxu1 %v1454_v13  ;;  %1931 = vmatprep.mubr.msk.f32.mxu1 %vm2094_vm1, %v2093_v7 }
 0x5ba   :  { %1932 = vmatmul.mubr.msk.f32.vlgmr.msra.gmra.mxu1 %vm176_vm2, %v2372_v14 }
 0x662   :  { %v501_v15 = vpop.f32.mrf.mxu1 }
 0x663   :  { %838 = vrot.lane.b32.xlu0 %v501_v15, %s2091_s21 }
 0x664   :  { %v1873_v16 = vpop.f32.mrf.mxu1 }
 0x666   :  { %v667_v17 = vpop.f32.mrf.mxu1 }
 0x667   :  { %842 = vrot.lane.b32.xlu1 %v667_v17, %s2106_s8 }
 0x668   :  { %v1883_v20 = vpop.f32.mrf.mxu1 }
 0x669   :  { %v1795_v20 = vld [vmem:[%s2447_s5] ss:$0 sm:$0xff] }
 0x66a   :  { %v833_v7 = vpop.f32.mrf.mxu1 }
 0x66b   :  { %846 = vrot.lane.b32.xlu1 %v833_v7, %s2107_s22 }
 0x66c   :  { %v1893_v23 = vpop.f32.mrf.mxu1 }
 0x66e   :  { %v1027_v24 = vpop.f32.mrf.mxu1 }
 0x670   :  { %v1903_v25 = vpop.f32.mrf.mxu1 }
 0x672   :  { %v1193_v26 = vpop.f32.mrf.mxu1 }
 0x673   :  { %1530 = vrot.lane.b32.xlu0 %v1193_v26, %s2091_s21 }
 0x674   :  { %v1913_v27 = vpop.f32.mrf.mxu1 }
 0x676   :  { %v1359_v28 = vpop.f32.mrf.mxu1 }
 0x677   :  { %1534 = vrot.lane.b32.xlu0 %v1359_v28, %s2106_s8 }
 0x678   :  { %v1923_v29 = vpop.f32.mrf.mxu1 }
 0x67a   :  { %v1525_v30 = vpop.f32.mrf.mxu1 }
 0x67b   :  { %1538 = vrot.lane.b32.xlu1 %v1525_v30, %s2107_s22 }
 0x67c   :  { %v1933_v31 = vpop.f32.mrf.mxu1 }
 0x6d5   :  { %v839_v32 = vpop.permute.xlu0 %838 }
 0x6d6   :  { %v849_v34 = vsel %vm176_vm2, %v2280_v53, %v839_v32  ;;  %v1792_v53 = vld [vmem:[%s2446_s4] ss:$0 sm:$0xff] }
 0x6d9   :  { %v843_v33 = vpop.permute.xlu1 %842 }
 0x6da   :  { %v851_v35 = vsel %vm850_vm3, %v849_v34, %v843_v33 }
 0x6dd   :  { %v847_v36 = vpop.permute.xlu1 %846 }
 0x6de   :  { %v853_v37 = vsel %vm852_vm4, %v851_v35, %v847_v36 }
 0x6df   :  { %1942 = vmatprep.mubr.msk.f32.mxu0 %vm91_vm0, %v853_v37 }
 0x6e5   :  { %v1531_v39 = vpop.permute.xlu0 %1530 }
 0x6e6   :  { %v1541_v41 = vsel %vm176_vm2, %v1027_v24, %v1531_v39 }
 0x6e9   :  { %v1535_v40 = vpop.permute.xlu0 %1534 }
 0x6ea   :  { %v1542_v42 = vsel %vm850_vm3, %v1541_v41, %v1535_v40  ;;  %v1797_v40 = vld [vmem:[%s2449_s7] ss:$0 sm:$0xff] }
 0x6ed   :  { %v1539_v43 = vpop.permute.xlu1 %1538 }
 0x6ee   :  { %v1543_v44 = vsel %vm852_vm4, %v1542_v42, %v1539_v43 }
 0x6ef   :  { %1943 = vmatmul.mubr.msk.f32.vlgmr.msra.gmra.mxu0 %vm91_vm0, %v1543_v44 }
 0x7af   :  { %v1944_v45 = vpop.f32.mrf.mxu0 }
 0x7b0   :  { %v1647_v46 = vadd.f32 %v1944_v45, %v1792_v53 }
 0x7b1   :  { %v1641_v47 = vpop.f32.mrf.mxu0 }
 0x7b2   :  { %v1642_v48 = vadd.f32 %v1792_v53, %v1641_v47  ;;  %v1651_v49 = vadd.f32 %v1647_v46, %v2189_v6 }
 0x7b4   :  { %v1655_v50 = vsel %vm91_vm0, %v1651_v49, 0.0  ;;  %v1650_v51 = vadd.f32 %v1642_v48, %v2185_v3 }
 0x7b5   :  { %1656 = vadd.xlane.f32.xlu0 %v1655_v50 }
 0x7b6   :  { %v1652_v52 = vsel %vm91_vm0, %v1650_v51, 0.0 }
 0x7b7   :  { %1653 = vadd.xlane.f32.xlu1 %v1652_v52 }
 0x7c8   :  { %854 = vrot.lane.b32.xlu1 %v2325_v57, %s2091_s21 }
 0x7cc   :  { %860 = vrot.lane.b32.xlu1 %v2341_v61, %s2107_s22 }
 0x7d0   :  { %1544 = vrot.lane.b32.xlu1 %v2357_v4, %s2091_s21 }
 0x7d4   :  { %1550 = vrot.lane.b32.xlu1 %v2372_v14, %s2107_s22 }
 0x83e   :  { %v1657_v6 = vpop.xlane.xlu0 %1656 }
 0x83f   :  { %v1660_v54 = vmul.f32 0.03125, %v1657_v6 }
 0x840   :  { %v1654_v55 = vpop.xlane.xlu1 %1653 }
 0x841   :  { %v1662_v3 = vsub.f32 %v1651_v49, %v1660_v54  ;;  %v1659_v56 = vmul.f32 0.03125, %v1654_v55 }
 0x843   :  { %v1661_v12 = vsub.f32 %v1650_v51, %v1659_v56  ;;  %v1664_v10 = vmul.f32 %v1662_v3, %v1662_v3 }
 0x844   :  { %v855_v61 = vpop.permute.xlu1 %854 }
 0x845   :  { %v1668_v59 = vsel %vm91_vm0, %v1664_v10, 0.0  ;;  %v1663_v60 = vmul.f32 %v1661_v12, %v1661_v12  ;;  %v863_v13 = vsel %vm176_vm2, %v2258_v38, %v855_v61 }
 0x846   :  { %1669 = vadd.xlane.f32.xlu0 %v1668_v59 }
 0x847   :  { %v1665_v57 = vsel %vm91_vm0, %v1663_v60, 0.0 }
 0x848   :  { %v861_v63 = vpop.permute.xlu1 %860 }
 0x84a   :  { %1666 = vadd.xlane.f32.xlu0 %v1665_v57 }
 0x84c   :  { %v1545_v8 = vpop.permute.xlu1 %1544 }
 0x850   :  { %v1551_v17 = vpop.permute.xlu1 %1550 }
 0x860   :  { %857 = vrot.lane.b32.xlu0 %v2333_v58, %s2106_s8 }
 0x864   :  { %1547 = vrot.lane.b32.xlu0 %v2365_v9, %s2106_s8  ;;  %v1553_v9 = vsel %vm176_vm2, %v2349_v0, %v1545_v8 }
 0x8cf   :  { %v1670_v62 = vpop.xlane.xlu0 %1669 }
 0x8d0   :  { %v1672_v1 = vmul.f32 0.03125, %v1670_v62 }
 0x8d2   :  { %v1674_v2 = vadd.f32 1e-05, %v1672_v1 }
 0x8d3   :  { %v1667_v4 = vpop.xlane.xlu0 %1666 }
 0x8d4   :  { %1998 = vrsqrt.f32 %v1674_v2  ;;  %v1671_v5 = vmul.f32 0.03125, %v1667_v4 }
 0x8d6   :  { %v1673_v11 = vadd.f32 1e-05, %v1671_v5 }
 0x8d7   :  { %v858_v14 = vpop.permute.xlu0 %857 }
 0x8d8   :  { %2000 = vrsqrt.f32 %v1673_v11  ;;  %v864_v58 = vsel %vm850_vm3, %v863_v13, %v858_v14 }
 0x8d9   :  { %v865_v15 = vsel %vm852_vm4, %v864_v58, %v861_v63 }
 0x8da   :  { %1556 = vst.msk [vmem:[#allocation9] sm:$0xff] %vm91_vm0, %v865_v15 }
 0x8db   :  { %v1548_v16 = vpop.permute.xlu0 %1547 }
 0x8dc   :  { %v1554_v18 = vsel %vm850_vm3, %v1553_v9, %v1548_v16 }
 0x8dd   :  { %v1555_v19 = vsel %vm852_vm4, %v1554_v18, %v1551_v17 }
 0x8de   :  { %1557 = vst.msk [vmem:[#allocation9 + $0x8] sm:$0xff] %vm91_vm0, %v1555_v19 }
 0x8e1   :  { %v1999_v38 = vpop.eup %1998 }
 0x8e2   :  { %v1678_v7 = vmul.f32 %v1999_v38, %v1662_v3 }
 0x8e4   :  { %v1687_v22 = vmul.f32 %v1795_v20, %v1678_v7 }
 0x8e5   :  { %v2001_v0 = vpop.eup %2000 }
 0x8e6   :  { %v1677_v23 = vmul.f32 %v2001_v0, %v1661_v12  ;;  %v1696_v24 = vadd.f32 %v1796_v21, %v1687_v22 }
 0x8e8   :  { %v1686_v25 = vmul.f32 %v1795_v20, %v1677_v23  ;;  %v1704_v26 = vsel %vm91_vm0, %v1696_v24, 0.0 }
 0x8e9   :  { %v1705_v27 = vrot.slane %v1704_v26, 4 }
 0x8ea   :  { %v1695_v28 = vadd.f32 %v1796_v21, %v1686_v25 }
 0x8eb   :  { %v1706_v29 = vadd.f32 %v1705_v27, %v1704_v26 }
 0x8ec   :  { %v1697_v30 = vsel %vm91_vm0, %v1695_v28, 0.0 }
 0x8ed   :  { %v1698_v31 = vrot.slane %v1697_v30, 4  ;;  %v1707_v32 = vrot.slane %v1706_v29, 2 }
 0x8ef   :  { %v1699_v33 = vadd.f32 %v1698_v31, %v1697_v30  ;;  %v1708_v34 = vadd.f32 %v1707_v32, %v1706_v29 }
 0x8f1   :  { %v1700_v35 = vrot.slane %v1699_v33, 2  ;;  %v1709_v36 = vrot.slane %v1708_v34, 1 }
 0x8f3   :  { %v1701_v37 = vadd.f32 %v1700_v35, %v1699_v33  ;;  %v1710_v39 = vadd.f32 %v1709_v36, %v1708_v34 }
 0x8f5   :  { %v1702_v41 = vrot.slane %v1701_v37, 1  ;;  %v1713_v42 = vmul.f32 0.125, %v1710_v39 }
 0x8f7   :  { %v1703_v43 = vadd.f32 %v1702_v41, %v1701_v37  ;;  %v1722_v44 = vmul.f32 %v1797_v40, %v1713_v42 }
 0x8f9   :  { %v1712_v53 = vmul.f32 0.125, %v1703_v43  ;;  %v1725_v46 = vrot.slane %v1722_v44, 7 }
 0x8fb   :  { %v1721_v45 = vmul.f32 %v1797_v40, %v1712_v53 }
 0x8fd   :  { %v1727_v47 = vsel %vm1726_vm5, %v1725_v46, %v1721_v45 }
 0x8fe   :  { %v1730_v48 = vsel %vm1729_vm6, %v1727_v47, 0.0 }
 0x8ff   :  { %1731 = vadd.xlane.f32.xlu0 %v1730_v48 }
 0x900   :  { %2073 = shalt.err (!%p2070_p5)
}
 0x901   :  { %1756 = dma.vmem_to_hbm [thread:$0]  %s1751_s1, 256, %s2452_s10, [#allocation5], %s2090_s20, %s2090_s20, %s2091_s21   ;;  %v1798_v49 = vld [vmem:[#allocation2] ss:$0 sm:$0xff]  ;;  %vm1741_vm7 = vcmask 1024  }
 0x988   :  { %v1732_v50 = vpop.xlane.xlu0 %1731 }
 0x989   :  { %v1740_v51 = vadd.f32 %v1798_v49, %v1732_v50 }
 0x98b   :  { %1742 = vst.msk [vmem:[%s2451_s9] sm:$0x3] %vm1741_vm7, %v1740_v51 }
 0x98c   :  { %2086 = dma.done.wait [#allocation5], 256  }
 0x98d   :  { %2087 = vsyncadd [#allocation5], 4294967040 }
 0x98e   :  { %1762 = vsyncpa [#allocation4], 1 }
 0x98f   :  { %1763 = vsyncpa [#allocation7], 1 }
 0x990   :  { %1764 = vsyncpa [#allocation5], 1 }

</bundles_post_ra>
